<compile_context>
chip_gen: v6e
topology: v6e:2x2x1
jax: 0.10.0
libtpu: 0.0.40
codegen_flags: <defaults>
</compile_context>

<pallas_src>
import jax
import jax.numpy as jnp
from jax.experimental import pallas as pl
from jax.experimental.pallas import tpu as pltpu


# ----------------------------- kernel body ----------------------------------
def _sigmoid_kernel(x_ref, o_ref):
    # sigmoid(x) = 0.5 * (tanh(0.5*x) + 1)
    #   * one EUP op / element (tanh) -> stays HBM-bandwidth-bound on v7x
    #   * numerically stable for arbitrarily large |x| (no exp overflow and
    #     no inf*0 NaN hazard of the 1/(1+exp(-x)) + approx-reciprocal form)
    x = x_ref[...].astype(jnp.float32)          # f32 compute (safe on v5e too)
    y = 0.5 * (jnp.tanh(0.5 * x) + 1.0)
    o_ref[...] = y.astype(o_ref.dtype)          # store back in native dtype


# ----------------------------- wrapper ---------------------------------------
_LANE_CANDIDATES = (4096, 2048, 1024, 512, 256, 128)
_TARGET_BLOCK_BYTES = 2 * 1024 * 1024   # 2 MiB/block: in+out double-buffered = 8 MiB
                                        # << v5e's 16 MiB scoped-VMEM default.
_SMALL_BYPASS_BYTES = 1 * 1024 * 1024   # below ~1 MiB the fused XLA sigmoid wins.
_MIN_GRID_STEPS = 8                     # >= 4 steps per TC on v7x (2 TCs), hides DMA.


def _sublane_multiple(itemsize: int) -> int:
    # f32 -> 8 rows/vreg, bf16/f16 -> 16, int8/fp8 -> 32 (sublane packing).
    return {1: 32, 2: 16}.get(itemsize, 8)


def _run_sigmoid_2d(x2d, rows, L, itemsize, out_dtype):
    sub = _sublane_multiple(itemsize)
    # Biggest block (multiple-of-`sub` rows) that fits the 2 MiB budget.
    cap = max(sub, ((_TARGET_BLOCK_BYTES // (L * itemsize)) // sub) * sub)
    # For inputs large enough to matter, guarantee >= _MIN_GRID_STEPS grid
    # steps so both v7x TensorCores run and prologue/epilogue DMA is hidden.
    if rows * L * itemsize >= _SMALL_BYPASS_BYTES:
        per_step = max(sub, (pl.cdiv(rows, _MIN_GRID_STEPS) // sub) * sub)
        cap = min(cap, per_step)
    block_rows = rows if rows <= cap else cap   # full-extent block always legal
    grid = (pl.cdiv(rows, block_rows),)         # partial last block is masked

    return pl.pallas_call(
        _sigmoid_kernel,
        out_shape=jax.ShapeDtypeStruct((rows, L), out_dtype),
        grid_spec=pltpu.PrefetchScalarGridSpec(
            num_scalar_prefetch=0,
            grid=grid,
            in_specs=[pl.BlockSpec((block_rows, L), lambda i: (i, 0))],
            out_specs=pl.BlockSpec((block_rows, L), lambda i: (i, 0)),
        ),
        # TODO(synk): on v7x, verify in a profile that "parallel" shards the
        # grid across both TensorCores; if not, switch to pltpu.CORE_PARALLEL.
        compiler_params=pltpu.CompilerParams(
            dimension_semantics=("parallel",)),
    )(x2d)


def pallas_sigmoid(textures: jax.Array, *, force_pallas: bool = False) -> jax.Array:
    """sigmoid(textures) via a Pallas TPU kernel (arbitrary-rank float input)."""
    orig_shape = textures.shape
    orig_dtype = textures.dtype
    n = textures.size
    if n == 0:
        return textures
    itemsize = textures.dtype.itemsize

    # Tiny textures: kernel launch + pipeline prologue dwarfs the work.
    if not force_pallas and n * itemsize < _SMALL_BYPASS_BYTES:
        return jax.nn.sigmoid(textures)

    n_main = (n // 128) * 128               # lane-aligned prefix handled by Pallas
    if n_main == 0:                         # fewer than 128 elements total
        return jax.nn.sigmoid(textures)

    flat = textures.reshape(-1)             # metadata-only, native dtype

    # Lane-dense width L: largest candidate dividing the aligned prefix.
    L = 128
    for cand in _LANE_CANDIDATES:
        if n_main % cand == 0:
            L = cand
            break
    rows = n_main // L

    if n_main == n:                         # fast path: no pad, no slice, no concat
        x2d = flat.reshape(rows, L)         # metadata-only
        out2d = _run_sigmoid_2d(x2d, rows, L, itemsize, orig_dtype)
        return out2d.reshape(orig_shape)

    # Ragged tail (< 128 elems): kernel on the aligned prefix, XLA on the tail.
    main = flat[:n_main].reshape(rows, L)
    out_main = _run_sigmoid_2d(main, rows, L, itemsize, orig_dtype).reshape(-1)
    out_tail = jax.nn.sigmoid(flat[n_main:])
    return jnp.concatenate([out_main, out_tail]).reshape(orig_shape)


# ----------------------------- demo / checks ---------------------------------
if __name__ == "__main__":
    key = jax.random.PRNGKey(0)
    k0, k1, k2, k3 = jax.random.split(key, 4)

    # Primary example matching the module spec: textures param (N=2, C=4, 16x16).
    textures = jax.random.normal(k0, (2, 4, 16, 16), dtype=jnp.float32)
    out = jax.block_until_ready(pallas_sigmoid(textures, force_pallas=True))
    ref = jax.nn.sigmoid(textures)
    assert out.shape == textures.shape and out.dtype == textures.dtype
    assert jnp.max(jnp.abs(out - ref)) < 1e-5

    # Small-input bypass path (default, no force) must also be correct.
    out_bypass = jax.block_until_ready(pallas_sigmoid(textures))
    assert jnp.max(jnp.abs(out_bypass - ref)) < 1e-5

    # Larger aligned f32 texture: lane-dense tiling + >= 8 grid steps.
    big = jax.random.normal(k1, (2, 4, 384, 256), dtype=jnp.float32)
    out_big = jax.block_until_ready(pallas_sigmoid(big))
    assert jnp.max(jnp.abs(out_big - jax.nn.sigmoid(big))) < 1e-5

    # bf16 parameter: native-dtype DMA path (compute still f32 in-kernel).
    bf = jax.random.normal(k2, (2, 4, 128, 128), dtype=jnp.bfloat16)
    out_bf = jax.block_until_ready(pallas_sigmoid(bf, force_pallas=True))
    assert out_bf.dtype == jnp.bfloat16
    assert jnp.max(jnp.abs(out_bf.astype(jnp.float32) -
                           jax.nn.sigmoid(bf).astype(jnp.float32))) < 1e-2

    # Ragged (size % 128 != 0): aligned prefix via kernel, tiny tail via XLA.
    rag = jax.random.normal(k3, (3, 5, 7, 11), dtype=jnp.float32)
    out_rag = jax.block_until_ready(pallas_sigmoid(rag, force_pallas=True))
    assert out_rag.shape == rag.shape
    assert jnp.max(jnp.abs(out_rag - jax.nn.sigmoid(rag))) < 1e-5

    # Saturated inputs: must be finite and match (old exp+rcp form produced NaN).
    sat = jnp.linspace(-200.0, 200.0, 16 * 128, dtype=jnp.float32).reshape(16, 128)
    out_sat = jax.block_until_ready(pallas_sigmoid(sat, force_pallas=True))
    assert bool(jnp.all(jnp.isfinite(out_sat)))
    assert jnp.max(jnp.abs(out_sat - jax.nn.sigmoid(sat))) < 1e-5

    print("KERNEL_OK")
</pallas_src>

<mosaic_0001>
module attributes {stable_mosaic.version = 11 : i64} {
  func.func @_sigmoid_kernel(%arg0: i32, %arg1: memref<1x2048xf32, #tpu.memory_space<vmem>>, %arg2: memref<1x2048xf32, #tpu.memory_space<vmem>>) attributes {dimension_semantics = [#tpu.dimension_semantics<parallel>], iteration_bounds = array<i64: 1>, scalar_prefetch = 0 : i64, scratch_operands = 0 : i64, tpu.core_type = #tpu.core_type<tc>, window_params = [{transform_indices = @transform_0, window_bounds = array<i64: 1, 2048>}, {transform_indices = @transform_1, window_bounds = array<i64: 1, 2048>}]} {
    %c0 = arith.constant 0 : index
    %c0_0 = arith.constant 0 : index
    %0 = vector.load %arg1[%c0, %c0_0] : memref<1x2048xf32, #tpu.memory_space<vmem>>, vector<1x2048xf32>
    %cst = arith.constant 5.000000e-01 : f32
    %1 = vector.broadcast %cst : f32 to vector<1x2048xf32>
    %2 = arith.mulf %1, %0 : vector<1x2048xf32>
    %3 = math.tanh %2 : vector<1x2048xf32>
    %cst_1 = arith.constant 1.000000e+00 : f32
    %4 = vector.broadcast %cst_1 : f32 to vector<1x2048xf32>
    %5 = arith.addf %3, %4 : vector<1x2048xf32>
    %cst_2 = arith.constant 5.000000e-01 : f32
    %6 = vector.broadcast %cst_2 : f32 to vector<1x2048xf32>
    %7 = arith.mulf %6, %5 : vector<1x2048xf32>
    %c0_3 = arith.constant 0 : index
    %c0_4 = arith.constant 0 : index
    %8 = vector.load %arg2[%c0_3, %c0_4] : memref<1x2048xf32, #tpu.memory_space<vmem>>, vector<1x2048xf32>
    tpu.vector_store %arg2[%c0_3, %c0_4], %7 {strides = array<i32>} : memref<1x2048xf32, #tpu.memory_space<vmem>>, vector<1x2048xf32>,
    return
  }
  func.func @transform_0(%arg0: i32) -> (i32, i32) {
    %c0_i32 = arith.constant 0 : i32
    %c0_i32_0 = arith.constant 0 : i32
    return %arg0, %c0_i32 : i32, i32
  }
  func.func @transform_1(%arg0: i32) -> (i32, i32) {
    %c0_i32 = arith.constant 0 : i32
    %c0_i32_0 = arith.constant 0 : i32
    return %arg0, %c0_i32 : i32, i32
  }
}

</mosaic_0001>

<bundles_post_ra>
// kernel: tpu_custom_call.1
= control target key start
LH: loop header
LB: loop body
LE: loop exit
PB: predicated region body
PF: predicated region fallthrough
CT: control target
= control target key end

     0   :  { %6 = vsyncpa [#allocation3], 0  ;;  %s116_s0 = inlined_call_operand.hbm [shape: f32[1,2048], index: 0, kind: input, shape index: {}]   ;;  %s117_s1 = inlined_call_operand.hbm [shape: f32[1,2048], index: 1, kind: output, shape index: {}]  }
   0x1   :  { %7 = vsyncpa [#allocation4], 0  ;;  %s98_s6 = smov [#allocation2]  }
   0x2   :  { %s14_s7 = sshll.u32 %s98_s6, 4  ;;  %s15_s7 = int_to_ptr.vmem [resolvable:$true] %s14_s7 }
   0x3   :  { %s62_s8 = scalar_lea.vmem %s15_s7, 256  ;;  %p67_p1 = scmp.lt.s32.totalorder %s15_s7, %s15_s7 }
   0x4   :  { %p63_p0 = scmp.ne.s32.totalorder %s15_s7, %s62_s8  ;;  %p68_p2 = scmp.lt.s32.totalorder %s62_s8, %s62_s8 }
   0x6   :  { %p69_p3 = por %p68_p2, %p67_p1 }
   0x8   :  { %p70_p4 = pnand %p69_p3, %p63_p0 }
   0xa   :  { %73 = shalt.err (!%p70_p4)
}
   0xb   :  { %17 = dma.hbm_to_vmem [thread:$0]  %s116_s0, 256, %s15_s7, [#allocation3]  }
   0xc   :  { %94 = dma.done.wait [#allocation3], 256  }
   0xd   :  { %95 = vsyncadd [#allocation3], 4294967040  ;;  %v21_v0 = vld [vmem:[#allocation2] sm:$0xff]  ;;  %v22_v1 = vld [vmem:[#allocation2 + $0x8] sm:$0xff]  ;;  %s99_s11 = smov [#allocation5]  }
   0xe   :  { %v23_v2 = vmul.f32 0.5, %v21_v0  ;;  %v24_v3 = vmul.f32 0.5, %v22_v1  ;;  %s39_s12 = sshll.u32 %s99_s11, 4  ;;  %s40_s12 = int_to_ptr.vmem [resolvable:$true] %s39_s12 }
   0xf   :  { %s74_s0 = scalar_lea.vmem %s40_s12, 256  ;;  %p79_p6 = scmp.lt.s32.totalorder %s40_s12, %s40_s12 }
  0x10   :  { %50 = vtanh.f32 %v23_v2  ;;  %p75_p5 = scmp.ne.s32.totalorder %s40_s12, %s74_s0  ;;  %p80_p7 = scmp.lt.s32.totalorder %s74_s0, %s74_s0 }
  0x11   :  { %52 = vtanh.f32 %v24_v3 }
  0x12   :  { %p81_p8 = por %p80_p7, %p79_p6 }
  0x14   :  { %p82_p9 = pnand %p81_p8, %p75_p5 }
  0x1d   :  { %v51_v4 = vpop.eup %50 }
  0x1e   :  { %v53_v5 = vpop.eup %52  ;;  %v27_v6 = vadd.f32 1.0, %v51_v4 }
  0x1f   :  { %v28_v7 = vadd.f32 1.0, %v53_v5 }
  0x20   :  { %v29_v8 = vmul.f32 0.5, %v27_v6 }
  0x21   :  { %v30_v9 = vmul.f32 0.5, %v28_v7 }
  0x22   :  { %31 = vst [vmem:[#allocation5] sm:$0xff] %v29_v8 }
  0x23   :  { %32 = vst [vmem:[#allocation5 + $0x8] sm:$0xff] %v30_v9 }
  0x24   :  { %85 = shalt.err (!%p82_p9)
}
  0x25   :  { %42 = dma.vmem_to_hbm [thread:$0]  %s40_s12, 256, %s117_s1, [#allocation4]  }
  0x26   :  { %96 = dma.done.wait [#allocation4], 256  }
  0x27   :  { %97 = vsyncadd [#allocation4], 4294967040 }
  0x28   :  { %46 = vsyncpa [#allocation3], 1 }
  0x29   :  { %47 = vsyncpa [#allocation4], 1 }

</bundles_post_ra>
